<compile_context>
chip_gen: v7x
topology: tpu7x:2x2x1
jax: 0.10.0
libtpu: 0.0.40
codegen_flags: <defaults>
</compile_context>

<pallas_src>
from collections import namedtuple

import numpy as np
import jax
import jax.numpy as jnp
from jax import lax
from jax.experimental import pallas as pl
from jax.experimental.pallas import tpu as pltpu

Genotype = namedtuple("Genotype", "normal normal_concat reduce reduce_concat")

GENOTYPE = Genotype(
    normal=[[("sep_conv_3x3", 0), ("skip_connect", 1)],
            [("skip_connect", 0), ("sep_conv_3x3", 1)]],
    normal_concat=[2, 3],
    reduce=[[("sep_conv_3x3", 0), ("skip_connect", 1)],
            [("skip_connect", 0), ("sep_conv_3x3", 1)]],
    reduce_concat=[2, 3],
)

REDUCTION = False  # reduction_p=False, reduction=False


# ---------------------------------------------------------------------------
# Genotype analysis (static)
# ---------------------------------------------------------------------------
def _analyze_gene(gene, concat):
    """Per node: which preprocessed state feeds the SepConv edge / the skip edge."""
    sep_src, skip_src = [], []
    for edges in gene:
        assert len(edges) == 2 and {op for op, _ in edges} == {"sep_conv_3x3", "skip_connect"}, edges
        (op_a, ia), (op_b, ib) = edges
        si, ki = (ia, ib) if op_a == "sep_conv_3x3" else (ib, ia)
        # Channel-stacked (block-diagonal) execution of all nodes in parallel requires every
        # node to read only the two preprocessed cell inputs (true for this genotype).
        # TODO(synk): genotypes with node->node edges need a sequential node loop instead.
        assert si < 2 and ki < 2, (si, ki)
        sep_src.append(si)
        skip_src.append(ki)
    assert all(2 <= c < 2 + len(gene) for c in concat), concat
    return sep_src, skip_src


# ---------------------------------------------------------------------------
# Fused cell kernel (factory: genotype / shapes are static Python structure)
# ---------------------------------------------------------------------------
def _make_cell_kernel(H, W, C, sep_src, skip_src, concat):
    """All activations are laid out (channels, pixels) = (sublanes, lanes), lane = n*H*W + y*W + x.

    refs: masks(4,L), s0(Cpp,L), s1(Cp,L), wpre(2C,Cpp+Cp), bpre(2C,1),
          dw1(9,SC,1), pw1(SC,SC), b1(SC,1), dw2(9,SC,1), pw2(SC,SC), b2(SC,1), out(nC,L)
    with SC = n_nodes*C (channel-stacked nodes).  BN scale is pre-folded into wpre/pw*;
    b* is the remaining per-channel shift.
    """
    n_nodes = len(sep_src)

    def kernel(mask_ref, s0_ref, s1_ref, wpre_ref, bpre_ref,
               dw1_ref, pw1_ref, b1_ref, dw2_ref, pw2_ref, b2_ref, o_ref):
        L = s0_ref.shape[-1]
        # Four factorized SAME-padding boundary masks, loaded ONCE and shared by both depthwise
        # stages (2-D (4, L) operand: no (9,1,L) sublane-padding blow-up, no per-stage rebroadcast).
        m = mask_ref[...]
        m_up, m_dn = m[0:1, :], m[1:2, :]   # a source row above / below exists (y>=1 / y<=H-2)
        m_hl, m_hr = m[2:3, :], m[3:4, :]   # a source col to the left / right exists (x>=1 / x<=W-2)

        def dwconv3x3(xr, dw_ref):
            # Depthwise 3x3 / SAME over the flattened image-major lane axis, factorized as
            # (2 row rolls + row masks) -> (3 per-column 3-tap mixes) -> (2 col rolls + col masks):
            # ~20 VALU + 4 XLU ops/elem vs 26 VALU + 8 XLU for the naive 9x(roll*mask*tap) form.
            # Rolls wrap across image seams / tile edges, but every wrapped lane is zeroed by the
            # corresponding row/column mask.  Valid because each lane tile holds whole images
            # (L % (H*W) == 0) and 3x3 tap offsets are <= W+1 < H*W.
            dwv = dw_ref[...]                                   # (9, SC, 1), k = ky*3 + kx
            r_up = pltpu.roll(xr, W, axis=1) * m_up             # x(y-1, x), zero at y == 0
            r_dn = pltpu.roll(xr, L - W, axis=1) * m_dn         # x(y+1, x), zero at y == H-1
            col_l = dwv[0] * r_up + dwv[3] * xr + dwv[6] * r_dn     # taps with dx = -1
            col_c = dwv[1] * r_up + dwv[4] * xr + dwv[7] * r_dn     # taps with dx =  0
            col_r = dwv[2] * r_up + dwv[5] * xr + dwv[8] * r_dn     # taps with dx = +1
            acc = col_c
            acc = acc + pltpu.roll(col_l, 1, axis=1) * m_hl
            acc = acc + pltpu.roll(col_r, L - 1, axis=1) * m_hr
            return acc

        def sep_stage(x, dw_ref, pw_ref, b_ref):
            # ReLU -> depthwise 3x3 -> pointwise 1x1 (BN scale folded) -> + BN shift.
            # TODO(synk): on v6e/v7x the tap math could run in bf16 (VPU packs [16,128]) for ~2x
            #             VALU throughput; kept f32 here to stay well inside the check tolerance.
            y = dwconv3x3(jnp.maximum(x, 0.0), dw_ref)
            return jnp.dot(pw_ref[...], y, preferred_element_type=jnp.float32) + b_ref[...]

        # Fused preprocessing: both StdConvs (ReLU -> 1x1 -> BN) as ONE block-diagonal MXU matmul.
        xin = jnp.concatenate([jnp.maximum(s0_ref[...], 0.0),
                               jnp.maximum(s1_ref[...], 0.0)], axis=0)
        pre = jnp.dot(wpre_ref[...], xin, preferred_element_type=jnp.float32) + bpre_ref[...]

        # Channel-stack every node's SepConv input and run all SepConv3x3 edges as ONE depthwise
        # pass + ONE block-diagonal pointwise matmul per stage.
        if sep_src == list(range(n_nodes)) and n_nodes * C == pre.shape[0]:
            sep_in = pre                      # this genotype: stacked input is exactly [s0'; s1']
        else:
            sep_in = jnp.concatenate([pre[s * C:(s + 1) * C] for s in sep_src], axis=0)
        y = sep_stage(sep_in, dw1_ref, pw1_ref, b1_ref)
        y = sep_stage(y, dw2_ref, pw2_ref, b2_ref)

        # Node edge-sums (DropPath_ with p=0 is identity) + in-kernel channel concat.
        for j, st in enumerate(concat):
            node = st - 2
            ki = skip_src[node]
            o_ref[j * C:(j + 1) * C, :] = (y[node * C:(node + 1) * C]
                                           + pre[ki * C:(ki + 1) * C])

    return kernel


# ---------------------------------------------------------------------------
# Host-side helpers
# ---------------------------------------------------------------------------
def _boundary_masks(H, W, NB):
    """(4, NB*H*W) f32: [row-above exists, row-below exists, col-left exists, col-right exists]."""
    yy, xx = np.mgrid[0:H, 0:W]
    m = np.stack([(yy >= 1), (yy <= H - 2), (xx >= 1), (xx <= W - 2)]).astype(np.float32)
    m = m.reshape(4, H * W)
    return jnp.asarray(np.tile(m, (1, NB)))


def _pick_batch_tile(N, HW, live_rows):
    """Images per lane tile.  Constraints: whole images per tile; lane width a multiple of 128
    (unmasked stores + legal (8,128) BlockSpec); live VMEM within a budget that also fits v5e's
    16 MiB scoped default with double-buffered I/O; prefer >=2 grid steps (v7x has 2 TCs, and it
    enables DMA/compute overlap on all generations)."""
    budget_bytes = 6 * 1024 * 1024
    bytes_per_lane = 4 * live_rows
    aligned = [nb for nb in range(1, N + 1) if N % nb == 0 and (nb * HW) % 128 == 0]
    if not aligned:
        # TODO(synk): pad the lane axis to a 128-multiple instead of a whole-batch block.
        return N
    fitting = [nb for nb in aligned if nb * HW * bytes_per_lane <= budget_bytes]
    pool = fitting if fitting else aligned[:1]
    multi = [nb for nb in pool if N // nb >= 2]
    return max(multi) if multi else max(pool)


def _pack_params(params, C_pp, C_p, C, n_nodes):
    """Fold BN scales into the 1x1 weights and pack everything block-diagonally / stacked."""
    sc0, sh0 = params["pre0_bn"]
    sc1, sh1 = params["pre1_bn"]
    w0 = jnp.transpose(params["pre0_w"] * sc0[None, :])         # (C, C_pp), BN scale folded
    w1 = jnp.transpose(params["pre1_w"] * sc1[None, :])         # (C, C_p)
    wpre = jnp.zeros((2 * C, C_pp + C_p), jnp.float32)
    wpre = wpre.at[:C, :C_pp].set(w0).at[C:, C_pp:].set(w1)     # block diagonal
    bpre = jnp.concatenate([sh0, sh1])[:, None]

    SC = n_nodes * C

    def stack(stage):
        dws, pws, shs = [], [], []
        for e in params["sep"]:
            sc, sh = e["bn%d" % stage]
            dws.append(jnp.transpose(e["dw%d" % stage].reshape(C, 9)))   # (9, C), k = ky*3+kx
            pws.append(jnp.transpose(e["pw%d" % stage] * sc[None, :]))   # (C, C), BN scale folded
            shs.append(sh)
        dw = jnp.concatenate(dws, axis=1)[:, :, None]                    # (9, SC, 1)
        pw = jnp.zeros((SC, SC), jnp.float32)
        for i, blk in enumerate(pws):
            pw = pw.at[i * C:(i + 1) * C, i * C:(i + 1) * C].set(blk)    # block diagonal
        return dw, pw, jnp.concatenate(shs)[:, None]

    return (wpre, bpre) + stack(1) + stack(2)


# ---------------------------------------------------------------------------
# Full cell forward (single fused pallas_call), native lane-dense layout
# ---------------------------------------------------------------------------
def augment_cell_forward_cf(genotype, params, s0_cf, s1_cf, N, H, W):
    """Native entry point: activations are (channels, N*H*W) so a stack of cells never pays
    NCHW transposes between cells (layout boundary only at the network edges)."""
    gene = genotype.reduce if REDUCTION else genotype.normal
    concat = genotype.reduce_concat if REDUCTION else genotype.normal_concat
    C_pp, C_p = s0_cf.shape[0], s1_cf.shape[0]
    C = params["pre0_w"].shape[1]
    n_nodes = len(gene)
    SC, nC, HW = n_nodes * C, len(concat) * C, H * W
    assert s0_cf.shape[1] == N * HW and s1_cf.shape[1] == N * HW
    sep_src, skip_src = _analyze_gene(gene, concat)

    # Rough per-lane live-VMEM estimate (f32 rows): double-buffered I/O + stacked temporaries.
    live_rows = 2 * (C_pp + C_p) + 2 * nC + 4 * C + 12 * SC
    NB = _pick_batch_tile(N, HW, live_rows)
    L = NB * HW
    masks = _boundary_masks(H, W, NB)
    wpre, bpre, dw1, pw1, b1, dw2, pw2, b2 = _pack_params(params, C_pp, C_p, C, n_nodes)

    def cspec(shape):  # constant-index operand (resident across grid steps)
        zeros = (0,) * len(shape)
        return pl.BlockSpec(shape, lambda i, _z=zeros: _z)

    out_cf = pl.pallas_call(
        _make_cell_kernel(H, W, C, sep_src, skip_src, concat),
        out_shape=jax.ShapeDtypeStruct((nC, N * HW), jnp.float32),
        grid=(N // NB,),
        in_specs=[
            cspec((4, L)),
            pl.BlockSpec((C_pp, L), lambda i: (0, i)),
            pl.BlockSpec((C_p, L), lambda i: (0, i)),
            cspec((2 * C, C_pp + C_p)), cspec((2 * C, 1)),
            cspec((9, SC, 1)), cspec((SC, SC)), cspec((SC, 1)),
            cspec((9, SC, 1)), cspec((SC, SC)), cspec((SC, 1)),
        ],
        out_specs=pl.BlockSpec((nC, L), lambda i: (0, i)),
        compiler_params=pltpu.CompilerParams(
            dimension_semantics=("parallel",),
            vmem_limit_bytes=32 * 1024 * 1024),   # explicit; >= v5e default, <= v7x physical
    )(masks, s0_cf, s1_cf, wpre, bpre, dw1, pw1, b1, dw2, pw2, b2)
    return out_cf


def augment_cell_forward(genotype, params, s0, s1):
    """Thin NCHW adapter matching the PyTorch module interface (layout plumbing only)."""
    N, C_pp, H, W = s0.shape
    s0_cf = jnp.transpose(s0, (1, 0, 2, 3)).reshape(C_pp, N * H * W)
    s1_cf = jnp.transpose(s1, (1, 0, 2, 3)).reshape(s1.shape[1], N * H * W)
    out_cf = augment_cell_forward_cf(genotype, params, s0_cf, s1_cf, N, H, W)
    nC = out_cf.shape[0]
    return jnp.transpose(out_cf.reshape(nC, N, H, W), (1, 0, 2, 3))


# ---------------------------------------------------------------------------
# Deterministic synthetic parameters
# ---------------------------------------------------------------------------
def _bn_fold(key, C, eps=1e-5):
    k1, k2, k3, k4 = jax.random.split(key, 4)
    gamma = 1.0 + 0.1 * jax.random.normal(k1, (C,), jnp.float32)
    beta = 0.1 * jax.random.normal(k2, (C,), jnp.float32)
    mean = 0.1 * jax.random.normal(k3, (C,), jnp.float32)
    var = 1.0 + 0.1 * jax.random.uniform(k4, (C,), jnp.float32)
    sc = gamma / jnp.sqrt(var + eps)
    sh = beta - mean * sc
    return sc, sh


def _sep_edge_params(key, C):
    ks = jax.random.split(key, 6)
    return dict(
        dw1=0.2 * jax.random.normal(ks[0], (C, 3, 3), jnp.float32),  # torch (C,1,3,3) depthwise
        pw1=0.2 * jax.random.normal(ks[1], (C, C), jnp.float32),     # (Cin, Cout) = torch w.T
        bn1=_bn_fold(ks[2], C),
        dw2=0.2 * jax.random.normal(ks[3], (C, 3, 3), jnp.float32),
        pw2=0.2 * jax.random.normal(ks[4], (C, C), jnp.float32),
        bn2=_bn_fold(ks[5], C),
    )


def init_params(key, C_pp, C_p, C):
    ks = jax.random.split(key, 6)
    return dict(
        pre0_w=0.2 * jax.random.normal(ks[0], (C_pp, C), jnp.float32),  # (Cin, Cout)
        pre0_bn=_bn_fold(ks[1], C),
        pre1_w=0.2 * jax.random.normal(ks[2], (C_p, C), jnp.float32),
        pre1_bn=_bn_fold(ks[3], C),
        sep=[_sep_edge_params(ks[4], C), _sep_edge_params(ks[5], C)],   # one SepConv edge per node
    )


# ---------------------------------------------------------------------------
# Pure-JAX reference (lax.conv, un-folded params) for correctness check
# ---------------------------------------------------------------------------
def reference_forward(genotype, params, s0, s1):
    def conv1x1(x, w_mat):
        w = jnp.transpose(w_mat)[:, :, None, None]
        return lax.conv_general_dilated(
            x, w, (1, 1), "VALID", dimension_numbers=("NCHW", "OIHW", "NCHW"),
            precision=lax.Precision.HIGHEST)

    def bn(x, scsh):
        sc, sh = scsh
        return x * sc[None, :, None, None] + sh[None, :, None, None]

    def stdconv(x, w, scsh):
        return bn(conv1x1(jnp.maximum(x, 0.0), w), scsh)

    def dwconv3x3(x, dw):
        w = dw[:, None, :, :]
        return lax.conv_general_dilated(
            x, w, (1, 1), ((1, 1), (1, 1)), dimension_numbers=("NCHW", "OIHW", "NCHW"),
            feature_group_count=x.shape[1], precision=lax.Precision.HIGHEST)

    def sepconv(x, e):
        y = bn(conv1x1(dwconv3x3(jnp.maximum(x, 0.0), e["dw1"]), e["pw1"]), e["bn1"])
        y = bn(conv1x1(dwconv3x3(jnp.maximum(y, 0.0), e["dw2"]), e["pw2"]), e["bn2"])
        return y

    s0p = stdconv(s0, params["pre0_w"], params["pre0_bn"])
    s1p = stdconv(s1, params["pre1_w"], params["pre1_bn"])
    states = [s0p, s1p]
    for edges, eparams in zip(genotype.normal, params["sep"]):
        acc = None
        for op_name, s_idx in edges:
            if op_name == "skip_connect":
                y = states[s_idx]
            elif op_name == "sep_conv_3x3":
                y = sepconv(states[s_idx], eparams)
            else:
                raise NotImplementedError(op_name)
            acc = y if acc is None else acc + y
        states.append(acc)
    return jnp.concatenate([states[i] for i in genotype.normal_concat], axis=1)


# ---------------------------------------------------------------------------
if __name__ == "__main__":
    N, C_pp, C_p, C, H, W = 2, 8, 8, 16, 8, 8
    key = jax.random.PRNGKey(0)
    k_s0, k_s1, k_par = jax.random.split(key, 3)
    s0 = jax.random.normal(k_s0, (N, C_pp, H, W), jnp.float32)
    s1 = jax.random.normal(k_s1, (N, C_p, H, W), jnp.float32)
    params = init_params(k_par, C_pp, C_p, C)

    fwd = jax.jit(lambda p, a, b: augment_cell_forward(GENOTYPE, p, a, b))
    out = jax.block_until_ready(fwd(params, s0, s1))
    assert out.shape == (N, 2 * C, H, W), out.shape

    ref = reference_forward(GENOTYPE, params, s0, s1)
    err = float(jnp.max(jnp.abs(out - ref)))
    # The in-kernel MXU dots run at the default f32 contraction precision while the reference
    # uses lax.Precision.HIGHEST, so keep an honest (bf16-pass) tolerance rather than a tight one
    # (per the correctness review).  Real bugs produce O(1) relative errors and are still caught.
    tol = 2e-3 + 2e-2 * float(jnp.max(jnp.abs(ref)))
    if err > tol:
        raise AssertionError(f"Pallas cell mismatch: max err {err} > tol {tol}")
    print("KERNEL_OK")
</pallas_src>

<mosaic_0001>
module attributes {stable_mosaic.version = 11 : i64} {
  func.func @kernel(%arg0: i32, %arg1: memref<4x128xf32, #tpu.memory_space<vmem>>, %arg2: memref<8x128xf32, #tpu.memory_space<vmem>>, %arg3: memref<8x128xf32, #tpu.memory_space<vmem>>, %arg4: memref<32x16xf32, #tpu.memory_space<vmem>>, %arg5: memref<32x1xf32, #tpu.memory_space<vmem>>, %arg6: memref<9x32x1xf32, #tpu.memory_space<vmem>>, %arg7: memref<32x32xf32, #tpu.memory_space<vmem>>, %arg8: memref<32x1xf32, #tpu.memory_space<vmem>>, %arg9: memref<9x32x1xf32, #tpu.memory_space<vmem>>, %arg10: memref<32x32xf32, #tpu.memory_space<vmem>>, %arg11: memref<32x1xf32, #tpu.memory_space<vmem>>, %arg12: memref<32x128xf32, #tpu.memory_space<vmem>>) attributes {dimension_semantics = [#tpu.dimension_semantics<parallel>], iteration_bounds = array<i64: 1>, scalar_prefetch = 0 : i64, scratch_operands = 0 : i64, tpu.core_type = #tpu.core_type<tc>, window_params = [{pipeline_mode = #tpu.pipeline_mode<synchronous>, transform_indices = @transform_0, window_bounds = array<i64: 4, 128>}, {transform_indices = @transform_1, window_bounds = array<i64: 8, 128>}, {transform_indices = @transform_2, window_bounds = array<i64: 8, 128>}, {pipeline_mode = #tpu.pipeline_mode<synchronous>, transform_indices = @transform_3, window_bounds = array<i64: 32, 16>}, {pipeline_mode = #tpu.pipeline_mode<synchronous>, transform_indices = @transform_4, window_bounds = array<i64: 32, 1>}, {pipeline_mode = #tpu.pipeline_mode<synchronous>, transform_indices = @transform_5, window_bounds = array<i64: 9, 32, 1>}, {pipeline_mode = #tpu.pipeline_mode<synchronous>, transform_indices = @transform_6, window_bounds = array<i64: 32, 32>}, {pipeline_mode = #tpu.pipeline_mode<synchronous>, transform_indices = @transform_7, window_bounds = array<i64: 32, 1>}, {pipeline_mode = #tpu.pipeline_mode<synchronous>, transform_indices = @transform_8, window_bounds = array<i64: 9, 32, 1>}, {pipeline_mode = #tpu.pipeline_mode<synchronous>, transform_indices = @transform_9, window_bounds = array<i64: 32, 32>}, {pipeline_mode = #tpu.pipeline_mode<synchronous>, transform_indices = @transform_10, window_bounds = array<i64: 32, 1>}, {transform_indices = @transform_11, window_bounds = array<i64: 32, 128>}]} {
    %c0 = arith.constant 0 : index
    %c0_0 = arith.constant 0 : index
    %0 = vector.load %arg1[%c0, %c0_0] : memref<4x128xf32, #tpu.memory_space<vmem>>, vector<4x128xf32>
    %1 = vector.extract_strided_slice %0 {offsets = [0, 0], sizes = [1, 128], strides = [1, 1]} : vector<4x128xf32> to vector<1x128xf32>
    %2 = vector.extract_strided_slice %0 {offsets = [1, 0], sizes = [1, 128], strides = [1, 1]} : vector<4x128xf32> to vector<1x128xf32>
    %3 = vector.extract_strided_slice %0 {offsets = [2, 0], sizes = [1, 128], strides = [1, 1]} : vector<4x128xf32> to vector<1x128xf32>
    %4 = vector.extract_strided_slice %0 {offsets = [3, 0], sizes = [1, 128], strides = [1, 1]} : vector<4x128xf32> to vector<1x128xf32>
    %c0_1 = arith.constant 0 : index
    %c0_2 = arith.constant 0 : index
    %5 = vector.load %arg2[%c0_1, %c0_2] : memref<8x128xf32, #tpu.memory_space<vmem>>, vector<8x128xf32>
    %cst = arith.constant 0.000000e+00 : f32
    %6 = vector.broadcast %cst : f32 to vector<8x128xf32>
    %7 = arith.maximumf %5, %6 : vector<8x128xf32>
    %c0_3 = arith.constant 0 : index
    %c0_4 = arith.constant 0 : index
    %8 = vector.load %arg3[%c0_3, %c0_4] : memref<8x128xf32, #tpu.memory_space<vmem>>, vector<8x128xf32>
    %cst_5 = arith.constant 0.000000e+00 : f32
    %9 = vector.broadcast %cst_5 : f32 to vector<8x128xf32>
    %10 = arith.maximumf %8, %9 : vector<8x128xf32>
    %11 = tpu.concatenate %7, %10 in 0 : vector<8x128xf32>, vector<8x128xf32> -> vector<16x128xf32>
    %c0_6 = arith.constant 0 : index
    %c0_7 = arith.constant 0 : index
    %12 = vector.load %arg4[%c0_6, %c0_7] : memref<32x16xf32, #tpu.memory_space<vmem>>, vector<32x16xf32>
    %cst_8 = arith.constant dense<0.000000e+00> : vector<32x128xf32>
    %13 = tpu.matmul %12, %11, %cst_8 {dimension_numbers = #tpu.dot_dimension_numbers<[1], [0], [0], [1], [0, 0, 1, 1], [], []>} : vector<32x16xf32>, vector<16x128xf32>, vector<32x128xf32> -> vector<32x128xf32>
    %c0_9 = arith.constant 0 : index
    %c0_10 = arith.constant 0 : index
    %14 = vector.load %arg5[%c0_9, %c0_10] : memref<32x1xf32, #tpu.memory_space<vmem>>, vector<32x1xf32>
    %15 = vector.broadcast %14 : vector<32x1xf32> to vector<32x128xf32>
    %16 = arith.addf %13, %15 : vector<32x128xf32>
    %cst_11 = arith.constant 0.000000e+00 : f32
    %17 = vector.broadcast %cst_11 : f32 to vector<32x128xf32>
    %18 = arith.maximumf %16, %17 : vector<32x128xf32>
    %c0_12 = arith.constant 0 : index
    %c0_13 = arith.constant 0 : index
    %c0_14 = arith.constant 0 : index
    %19 = vector.load %arg6[%c0_12, %c0_13, %c0_14] : memref<9x32x1xf32, #tpu.memory_space<vmem>>, vector<9x32x1xf32>
    %c8_i32 = arith.constant 8 : i32
    %20 = tpu.dynamic_rotate %18 by %c8_i32 dim 1 : vector<32x128xf32>, i32 -> vector<32x128xf32>
    %21 = vector.broadcast %1 : vector<1x128xf32> to vector<32x128xf32>
    %22 = arith.mulf %20, %21 : vector<32x128xf32>
    %c120_i32 = arith.constant 120 : i32
    %23 = tpu.dynamic_rotate %18 by %c120_i32 dim 1 : vector<32x128xf32>, i32 -> vector<32x128xf32>
    %24 = vector.broadcast %2 : vector<1x128xf32> to vector<32x128xf32>
    %25 = arith.mulf %23, %24 : vector<32x128xf32>
    %26 = vector.extract_strided_slice %19 {offsets = [0, 0, 0], sizes = [1, 32, 1], strides = [1, 1, 1]} : vector<9x32x1xf32> to vector<1x32x1xf32>
    %27 = vector.shape_cast %26 : vector<1x32x1xf32> to vector<32x1xf32>
    %28 = vector.broadcast %27 : vector<32x1xf32> to vector<32x128xf32>
    %29 = arith.mulf %28, %22 : vector<32x128xf32>
    %30 = vector.extract_strided_slice %19 {offsets = [3, 0, 0], sizes = [1, 32, 1], strides = [1, 1, 1]} : vector<9x32x1xf32> to vector<1x32x1xf32>
    %31 = vector.shape_cast %30 : vector<1x32x1xf32> to vector<32x1xf32>
    %32 = vector.broadcast %31 : vector<32x1xf32> to vector<32x128xf32>
    %33 = arith.mulf %32, %18 : vector<32x128xf32>
    %34 = arith.addf %29, %33 : vector<32x128xf32>
    %35 = vector.extract_strided_slice %19 {offsets = [6, 0, 0], sizes = [1, 32, 1], strides = [1, 1, 1]} : vector<9x32x1xf32> to vector<1x32x1xf32>
    %36 = vector.shape_cast %35 : vector<1x32x1xf32> to vector<32x1xf32>
    %37 = vector.broadcast %36 : vector<32x1xf32> to vector<32x128xf32>
    %38 = arith.mulf %37, %25 : vector<32x128xf32>
    %39 = arith.addf %34, %38 : vector<32x128xf32>
    %40 = vector.extract_strided_slice %19 {offsets = [1, 0, 0], sizes = [1, 32, 1], strides = [1, 1, 1]} : vector<9x32x1xf32> to vector<1x32x1xf32>
    %41 = vector.shape_cast %40 : vector<1x32x1xf32> to vector<32x1xf32>
    %42 = vector.broadcast %41 : vector<32x1xf32> to vector<32x128xf32>
    %43 = arith.mulf %42, %22 : vector<32x128xf32>
    %44 = vector.extract_strided_slice %19 {offsets = [4, 0, 0], sizes = [1, 32, 1], strides = [1, 1, 1]} : vector<9x32x1xf32> to vector<1x32x1xf32>
    %45 = vector.shape_cast %44 : vector<1x32x1xf32> to vector<32x1xf32>
    %46 = vector.broadcast %45 : vector<32x1xf32> to vector<32x128xf32>
    %47 = arith.mulf %46, %18 : vector<32x128xf32>
    %48 = arith.addf %43, %47 : vector<32x128xf32>
    %49 = vector.extract_strided_slice %19 {offsets = [7, 0, 0], sizes = [1, 32, 1], strides = [1, 1, 1]} : vector<9x32x1xf32> to vector<1x32x1xf32>
    %50 = vector.shape_cast %49 : vector<1x32x1xf32> to vector<32x1xf32>
    %51 = vector.broadcast %50 : vector<32x1xf32> to vector<32x128xf32>
    %52 = arith.mulf %51, %25 : vector<32x128xf32>
    %53 = arith.addf %48, %52 : vector<32x128xf32>
    %54 = vector.extract_strided_slice %19 {offsets = [2, 0, 0], sizes = [1, 32, 1], strides = [1, 1, 1]} : vector<9x32x1xf32> to vector<1x32x1xf32>
    %55 = vector.shape_cast %54 : vector<1x32x1xf32> to vector<32x1xf32>
    %56 = vector.broadcast %55 : vector<32x1xf32> to vector<32x128xf32>
    %57 = arith.mulf %56, %22 : vector<32x128xf32>
    %58 = vector.extract_strided_slice %19 {offsets = [5, 0, 0], sizes = [1, 32, 1], strides = [1, 1, 1]} : vector<9x32x1xf32> to vector<1x32x1xf32>
    %59 = vector.shape_cast %58 : vector<1x32x1xf32> to vector<32x1xf32>
    %60 = vector.broadcast %59 : vector<32x1xf32> to vector<32x128xf32>
    %61 = arith.mulf %60, %18 : vector<32x128xf32>
    %62 = arith.addf %57, %61 : vector<32x128xf32>
    %63 = vector.extract_strided_slice %19 {offsets = [8, 0, 0], sizes = [1, 32, 1], strides = [1, 1, 1]} : vector<9x32x1xf32> to vector<1x32x1xf32>
    %64 = vector.shape_cast %63 : vector<1x32x1xf32> to vector<32x1xf32>
    %65 = vector.broadcast %64 : vector<32x1xf32> to vector<32x128xf32>
    %66 = arith.mulf %65, %25 : vector<32x128xf32>
    %67 = arith.addf %62, %66 : vector<32x128xf32>
    %c1_i32 = arith.constant 1 : i32
    %68 = tpu.dynamic_rotate %39 by %c1_i32 dim 1 : vector<32x128xf32>, i32 -> vector<32x128xf32>
    %69 = vector.broadcast %3 : vector<1x128xf32> to vector<32x128xf32>
    %70 = arith.mulf %68, %69 : vector<32x128xf32>
    %71 = arith.addf %53, %70 : vector<32x128xf32>
    %c127_i32 = arith.constant 127 : i32
    %72 = tpu.dynamic_rotate %67 by %c127_i32 dim 1 : vector<32x128xf32>, i32 -> vector<32x128xf32>
    %73 = vector.broadcast %4 : vector<1x128xf32> to vector<32x128xf32>
    %74 = arith.mulf %72, %73 : vector<32x128xf32>
    %75 = arith.addf %71, %74 : vector<32x128xf32>
    %c0_15 = arith.constant 0 : index
    %c0_16 = arith.constant 0 : index
    %76 = vector.load %arg7[%c0_15, %c0_16] : memref<32x32xf32, #tpu.memory_space<vmem>>, vector<32x32xf32>
    %cst_17 = arith.constant dense<0.000000e+00> : vector<32x128xf32>
    %77 = tpu.matmul %76, %75, %cst_17 {dimension_numbers = #tpu.dot_dimension_numbers<[1], [0], [0], [1], [0, 0, 1, 1], [], []>} : vector<32x32xf32>, vector<32x128xf32>, vector<32x128xf32> -> vector<32x128xf32>
    %c0_18 = arith.constant 0 : index
    %c0_19 = arith.constant 0 : index
    %78 = vector.load %arg8[%c0_18, %c0_19] : memref<32x1xf32, #tpu.memory_space<vmem>>, vector<32x1xf32>
    %79 = vector.broadcast %78 : vector<32x1xf32> to vector<32x128xf32>
    %80 = arith.addf %77, %79 : vector<32x128xf32>
    %cst_20 = arith.constant 0.000000e+00 : f32
    %81 = vector.broadcast %cst_20 : f32 to vector<32x128xf32>
    %82 = arith.maximumf %80, %81 : vector<32x128xf32>
    %c0_21 = arith.constant 0 : index
    %c0_22 = arith.constant 0 : index
    %c0_23 = arith.constant 0 : index
    %83 = vector.load %arg9[%c0_21, %c0_22, %c0_23] : memref<9x32x1xf32, #tpu.memory_space<vmem>>, vector<9x32x1xf32>
    %c8_i32_24 = arith.constant 8 : i32
    %84 = tpu.dynamic_rotate %82 by %c8_i32_24 dim 1 : vector<32x128xf32>, i32 -> vector<32x128xf32>
    %85 = vector.broadcast %1 : vector<1x128xf32> to vector<32x128xf32>
    %86 = arith.mulf %84, %85 : vector<32x128xf32>
    %c120_i32_25 = arith.constant 120 : i32
    %87 = tpu.dynamic_rotate %82 by %c120_i32_25 dim 1 : vector<32x128xf32>, i32 -> vector<32x128xf32>
    %88 = vector.broadcast %2 : vector<1x128xf32> to vector<32x128xf32>
    %89 = arith.mulf %87, %88 : vector<32x128xf32>
    %90 = vector.extract_strided_slice %83 {offsets = [0, 0, 0], sizes = [1, 32, 1], strides = [1, 1, 1]} : vector<9x32x1xf32> to vector<1x32x1xf32>
    %91 = vector.shape_cast %90 : vector<1x32x1xf32> to vector<32x1xf32>
    %92 = vector.broadcast %91 : vector<32x1xf32> to vector<32x128xf32>
    %93 = arith.mulf %92, %86 : vector<32x128xf32>
    %94 = vector.extract_strided_slice %83 {offsets = [3, 0, 0], sizes = [1, 32, 1], strides = [1, 1, 1]} : vector<9x32x1xf32> to vector<1x32x1xf32>
    %95 = vector.shape_cast %94 : vector<1x32x1xf32> to vector<32x1xf32>
    %96 = vector.broadcast %95 : vector<32x1xf32> to vector<32x128xf32>
    %97 = arith.mulf %96, %82 : vector<32x128xf32>
    %98 = arith.addf %93, %97 : vector<32x128xf32>
    %99 = vector.extract_strided_slice %83 {offsets = [6, 0, 0], sizes = [1, 32, 1], strides = [1, 1, 1]} : vector<9x32x1xf32> to vector<1x32x1xf32>
    %100 = vector.shape_cast %99 : vector<1x32x1xf32> to vector<32x1xf32>
    %101 = vector.broadcast %100 : vector<32x1xf32> to vector<32x128xf32>
    %102 = arith.mulf %101, %89 : vector<32x128xf32>
    %103 = arith.addf %98, %102 : vector<32x128xf32>
    %104 = vector.extract_strided_slice %83 {offsets = [1, 0, 0], sizes = [1, 32, 1], strides = [1, 1, 1]} : vector<9x32x1xf32> to vector<1x32x1xf32>
    %105 = vector.shape_cast %104 : vector<1x32x1xf32> to vector<32x1xf32>
    %106 = vector.broadcast %105 : vector<32x1xf32> to vector<32x128xf32>
    %107 = arith.mulf %106, %86 : vector<32x128xf32>
    %108 = vector.extract_strided_slice %83 {offsets = [4, 0, 0], sizes = [1, 32, 1], strides = [1, 1, 1]} : vector<9x32x1xf32> to vector<1x32x1xf32>
    %109 = vector.shape_cast %108 : vector<1x32x1xf32> to vector<32x1xf32>
    %110 = vector.broadcast %109 : vector<32x1xf32> to vector<32x128xf32>
    %111 = arith.mulf %110, %82 : vector<32x128xf32>
    %112 = arith.addf %107, %111 : vector<32x128xf32>
    %113 = vector.extract_strided_slice %83 {offsets = [7, 0, 0], sizes = [1, 32, 1], strides = [1, 1, 1]} : vector<9x32x1xf32> to vector<1x32x1xf32>
    %114 = vector.shape_cast %113 : vector<1x32x1xf32> to vector<32x1xf32>
    %115 = vector.broadcast %114 : vector<32x1xf32> to vector<32x128xf32>
    %116 = arith.mulf %115, %89 : vector<32x128xf32>
    %117 = arith.addf %112, %116 : vector<32x128xf32>
    %118 = vector.extract_strided_slice %83 {offsets = [2, 0, 0], sizes = [1, 32, 1], strides = [1, 1, 1]} : vector<9x32x1xf32> to vector<1x32x1xf32>
    %119 = vector.shape_cast %118 : vector<1x32x1xf32> to vector<32x1xf32>
    %120 = vector.broadcast %119 : vector<32x1xf32> to vector<32x128xf32>
    %121 = arith.mulf %120, %86 : vector<32x128xf32>
    %122 = vector.extract_strided_slice %83 {offsets = [5, 0, 0], sizes = [1, 32, 1], strides = [1, 1, 1]} : vector<9x32x1xf32> to vector<1x32x1xf32>
    %123 = vector.shape_cast %122 : vector<1x32x1xf32> to vector<32x1xf32>
    %124 = vector.broadcast %123 : vector<32x1xf32> to vector<32x128xf32>
    %125 = arith.mulf %124, %82 : vector<32x128xf32>
    %126 = arith.addf %121, %125 : vector<32x128xf32>
    %127 = vector.extract_strided_slice %83 {offsets = [8, 0, 0], sizes = [1, 32, 1], strides = [1, 1, 1]} : vector<9x32x1xf32> to vector<1x32x1xf32>
    %128 = vector.shape_cast %127 : vector<1x32x1xf32> to vector<32x1xf32>
    %129 = vector.broadcast %128 : vector<32x1xf32> to vector<32x128xf32>
    %130 = arith.mulf %129, %89 : vector<32x128xf32>
    %131 = arith.addf %126, %130 : vector<32x128xf32>
    %c1_i32_26 = arith.constant 1 : i32
    %132 = tpu.dynamic_rotate %103 by %c1_i32_26 dim 1 : vector<32x128xf32>, i32 -> vector<32x128xf32>
    %133 = vector.broadcast %3 : vector<1x128xf32> to vector<32x128xf32>
    %134 = arith.mulf %132, %133 : vector<32x128xf32>
    %135 = arith.addf %117, %134 : vector<32x128xf32>
    %c127_i32_27 = arith.constant 127 : i32
    %136 = tpu.dynamic_rotate %131 by %c127_i32_27 dim 1 : vector<32x128xf32>, i32 -> vector<32x128xf32>
    %137 = vector.broadcast %4 : vector<1x128xf32> to vector<32x128xf32>
    %138 = arith.mulf %136, %137 : vector<32x128xf32>
    %139 = arith.addf %135, %138 : vector<32x128xf32>
    %c0_28 = arith.constant 0 : index
    %c0_29 = arith.constant 0 : index
    %140 = vector.load %arg10[%c0_28, %c0_29] : memref<32x32xf32, #tpu.memory_space<vmem>>, vector<32x32xf32>
    %cst_30 = arith.constant dense<0.000000e+00> : vector<32x128xf32>
    %141 = tpu.matmul %140, %139, %cst_30 {dimension_numbers = #tpu.dot_dimension_numbers<[1], [0], [0], [1], [0, 0, 1, 1], [], []>} : vector<32x32xf32>, vector<32x128xf32>, vector<32x128xf32> -> vector<32x128xf32>
    %c0_31 = arith.constant 0 : index
    %c0_32 = arith.constant 0 : index
    %142 = vector.load %arg11[%c0_31, %c0_32] : memref<32x1xf32, #tpu.memory_space<vmem>>, vector<32x1xf32>
    %143 = vector.broadcast %142 : vector<32x1xf32> to vector<32x128xf32>
    %144 = arith.addf %141, %143 : vector<32x128xf32>
    %145 = vector.extract_strided_slice %144 {offsets = [0, 0], sizes = [16, 128], strides = [1, 1]} : vector<32x128xf32> to vector<16x128xf32>
    %146 = vector.extract_strided_slice %16 {offsets = [16, 0], sizes = [16, 128], strides = [1, 1]} : vector<32x128xf32> to vector<16x128xf32>
    %147 = arith.addf %145, %146 : vector<16x128xf32>
    %c0_33 = arith.constant 0 : index
    %c0_34 = arith.constant 0 : index
    %148 = vector.load %arg12[%c0_33, %c0_34] : memref<32x128xf32, #tpu.memory_space<vmem>>, vector<16x128xf32>
    tpu.vector_store %arg12[%c0_33, %c0_34], %147 {strides = array<i32>} : memref<32x128xf32, #tpu.memory_space<vmem>>, vector<16x128xf32>,
    %149 = vector.extract_strided_slice %144 {offsets = [16, 0], sizes = [16, 128], strides = [1, 1]} : vector<32x128xf32> to vector<16x128xf32>
    %150 = vector.extract_strided_slice %16 {offsets = [0, 0], sizes = [16, 128], strides = [1, 1]} : vector<32x128xf32> to vector<16x128xf32>
    %151 = arith.addf %149, %150 : vector<16x128xf32>
    %c16 = arith.constant 16 : index
    %c0_35 = arith.constant 0 : index
    %152 = vector.load %arg12[%c16, %c0_35] : memref<32x128xf32, #tpu.memory_space<vmem>>, vector<16x128xf32>
    tpu.vector_store %arg12[%c16, %c0_35], %151 {strides = array<i32>} : memref<32x128xf32, #tpu.memory_space<vmem>>, vector<16x128xf32>,
    return
  }
  func.func @transform_0(%arg0: i32) -> (i32, i32) {
    %c0_i32 = arith.constant 0 : i32
    %c0_i32_0 = arith.constant 0 : i32
    %c0_i32_1 = arith.constant 0 : i32
    return %c0_i32, %c0_i32_0 : i32, i32
  }
  func.func @transform_1(%arg0: i32) -> (i32, i32) {
    %c0_i32 = arith.constant 0 : i32
    %c0_i32_0 = arith.constant 0 : i32
    return %c0_i32, %arg0 : i32, i32
  }
  func.func @transform_2(%arg0: i32) -> (i32, i32) {
    %c0_i32 = arith.constant 0 : i32
    %c0_i32_0 = arith.constant 0 : i32
    return %c0_i32, %arg0 : i32, i32
  }
  func.func @transform_3(%arg0: i32) -> (i32, i32) {
    %c0_i32 = arith.constant 0 : i32
    %c0_i32_0 = arith.constant 0 : i32
    %c0_i32_1 = arith.constant 0 : i32
    return %c0_i32, %c0_i32_0 : i32, i32
  }
  func.func @transform_4(%arg0: i32) -> (i32, i32) {
    %c0_i32 = arith.constant 0 : i32
    %c0_i32_0 = arith.constant 0 : i32
    %c0_i32_1 = arith.constant 0 : i32
    return %c0_i32, %c0_i32_0 : i32, i32
  }
  func.func @transform_5(%arg0: i32) -> (i32, i32, i32) {
    %c0_i32 = arith.constant 0 : i32
    %c0_i32_0 = arith.constant 0 : i32
    %c0_i32_1 = arith.constant 0 : i32
    %c0_i32_2 = arith.constant 0 : i32
    return %c0_i32, %c0_i32_0, %c0_i32_1 : i32, i32, i32
  }
  func.func @transform_6(%arg0: i32) -> (i32, i32) {
    %c0_i32 = arith.constant 0 : i32
    %c0_i32_0 = arith.constant 0 : i32
    %c0_i32_1 = arith.constant 0 : i32
    return %c0_i32, %c0_i32_0 : i32, i32
  }
  func.func @transform_7(%arg0: i32) -> (i32, i32) {
    %c0_i32 = arith.constant 0 : i32
    %c0_i32_0 = arith.constant 0 : i32
    %c0_i32_1 = arith.constant 0 : i32
    return %c0_i32, %c0_i32_0 : i32, i32
  }
  func.func @transform_8(%arg0: i32) -> (i32, i32, i32) {
    %c0_i32 = arith.constant 0 : i32
    %c0_i32_0 = arith.constant 0 : i32
    %c0_i32_1 = arith.constant 0 : i32
    %c0_i32_2 = arith.constant 0 : i32
    return %c0_i32, %c0_i32_0, %c0_i32_1 : i32, i32, i32
  }
  func.func @transform_9(%arg0: i32) -> (i32, i32) {
    %c0_i32 = arith.constant 0 : i32
    %c0_i32_0 = arith.constant 0 : i32
    %c0_i32_1 = arith.constant 0 : i32
    return %c0_i32, %c0_i32_0 : i32, i32
  }
  func.func @transform_10(%arg0: i32) -> (i32, i32) {
    %c0_i32 = arith.constant 0 : i32
    %c0_i32_0 = arith.constant 0 : i32
    %c0_i32_1 = arith.constant 0 : i32
    return %c0_i32, %c0_i32_0 : i32, i32
  }
  func.func @transform_11(%arg0: i32) -> (i32, i32) {
    %c0_i32 = arith.constant 0 : i32
    %c0_i32_0 = arith.constant 0 : i32
    return %c0_i32, %arg0 : i32, i32
  }
}

</mosaic_0001>

<bundles_post_ra>
// kernel: _lambda_.1
= control target key start
LH: loop header
LB: loop body
LE: loop exit
PB: predicated region body
PF: predicated region fallthrough
CT: control target
= control target key end

     0   :  { %vm71_vm0 = vcmask 130048   ;;  %v1219_v3 = vmov 0   ;;  %s1221_s18 = smov 120   ;;  %s1223_s23 = smov 127   ;;  %vm549_vm1 = vcmask 261120   ;;  %s1856_s1 = inlined_call_operand.vmem [shape: f32[8,128], index: 1, kind: input, shape index: {}]   ;;  %s1857_s2 = inlined_call_operand.vmem [shape: f32[8,128], index: 2, kind: input, shape index: {}]   ;;  %s1858_s3 = inlined_call_operand.vmem [shape: f32[32,16], index: 3, kind: input, shape index: {}]   ;;  %s1859_s4 = inlined_call_operand.vmem [shape: f32[32,1], index: 4, kind: input, shape index: {}]   ;;  %s1860_s5 = inlined_call_operand.vmem [shape: f32[9,32,1], index: 5, kind: input, shape index: {}]   ;;  %s1861_s0 = inlined_call_operand.vmem [shape: f32[4,128], index: 0, kind: input, shape index: {}]   ;;  %s1862_s6 = inlined_call_operand.vmem [shape: f32[32,32], index: 6, kind: input, shape index: {}]   ;;  %s1863_s7 = inlined_call_operand.vmem [shape: f32[32,1], index: 7, kind: input, shape index: {}]   ;;  %s1864_s8 = inlined_call_operand.vmem [shape: f32[9,32,1], index: 8, kind: input, shape index: {}]   ;;  %s1865_s9 = inlined_call_operand.vmem [shape: f32[32,32], index: 9, kind: input, shape index: {}]   ;;  %s1866_s10 = inlined_call_operand.vmem [shape: f32[32,1], index: 10, kind: input, shape index: {}]   ;;  %s1867_s11 = inlined_call_operand.vmem [shape: f32[32,128], index: 11, kind: output, shape index: {}]  }
   0x1   :  { %v39_v0 = vld [vmem:[%s1856_s1] sm:$0xff]  ;;  %1217 = vset.pattern.permute.xlu0 %v1219_v3  ;;  %1218 = vset.pattern.permute.xlu1 %v1219_v3  ;;  %v49_v7 = vld [vmem:[%s1859_s4 + $0x10] sm:$0xff]  ;;  %v48_v9 = vld [vmem:[%s1859_s4 + $0x8] sm:$0xff] }
   0x2   :  { %v41_v1 = vld [vmem:[%s1857_s2] sm:$0xff]  ;;  %v40_v4 = vmax.f32 %v39_v0, 0.0  ;;  %63 = vperm.xlu1 %1218, %v49_v7   ;;  %v50_v10 = vld [vmem:[%s1859_s4 + $0x18] sm:$0xff]  ;;  %v44_v11 = vld [vmem:[%s1858_s3 + $0x8] sm:$0xff] }
   0x3   :  { %v43_v2 = vld [vmem:[%s1858_s3] sm:$0xff]  ;;  %v42_v5 = vmax.f32 %v41_v1, 0.0  ;;  %v45_v12 = vld [vmem:[%s1858_s3 + $0x10] sm:$0xff]  ;;  %v174_v14 = vld [vmem:[%s1860_s5 + $0x8] sm:$0xff] }
   0x4   :  { %1158 = vmatprep.mubr.msk.f32.mxu0 %vm71_vm0, %v43_v2  ;;  %v47_v6 = vld [vmem:[%s1859_s4] sm:$0xff]  ;;  %v46_v15 = vld [vmem:[%s1858_s3 + $0x18] sm:$0xff]  ;;  %v186_v17 = vld [vmem:[%s1860_s5 + $0x68] sm:$0xff]  ;;  %s1220_s4 = smov 8  }
   0x5   :  { %v1192_v8 = vpack.c.bf16 %v42_v5, %v40_v4  ;;  %53 = vperm.xlu0 %1217, %v47_v6   ;;  %v173_v13 = vld [vmem:[%s1860_s5] sm:$0xff]  ;;  %v198_v19 = vld [vmem:[%s1860_s5 + $0xc8] sm:$0xff]  ;;  %v175_v24 = vld [vmem:[%s1860_s5 + $0x10] sm:$0xff] }
   0x6   :  { %68 = vperm.xlu1 %1218, %v50_v10   ;;  %v185_v16 = vld [vmem:[%s1860_s5 + $0x60] sm:$0xff]  ;;  %v182_v21 = vld [vmem:[%s1860_s5 + $0x48] sm:$0xff]  ;;  %v176_v25 = vld [vmem:[%s1860_s5 + $0x18] sm:$0xff] }
   0x7   :  { %1193 = vmatprep.subr.bf16.mxu0 %v1192_v8  ;;  %v197_v18 = vld [vmem:[%s1860_s5 + $0xc0] sm:$0xff]  ;;  %v194_v23 = vld [vmem:[%s1860_s5 + $0xa8] sm:$0xff]  ;;  %v187_v26 = vld [vmem:[%s1860_s5 + $0x70] sm:$0xff] }
   0x8   :  { %1195 = vmatpush3.bf16.msra.mxu0 %v1192_v8  ;;  %v181_v20 = vld [vmem:[%s1860_s5 + $0x40] sm:$0xff]  ;;  %v188_v27 = vld [vmem:[%s1860_s5 + $0x78] sm:$0xff]  ;;  %v206_v29 = vld [vmem:[%s1860_s5 + $0x108] sm:$0xff] }
   0x9   :  { %58 = vperm.xlu0 %1217, %v48_v9   ;;  %v193_v22 = vld [vmem:[%s1860_s5 + $0xa0] sm:$0xff]  ;;  %v199_v30 = vld [vmem:[%s1860_s5 + $0xd0] sm:$0xff]  ;;  %v200_v31 = vld [vmem:[%s1860_s5 + $0xd8] sm:$0xff] }
   0xa   :  { %248 = vperm.xlu1 %1218, %v174_v14   ;;  %v205_v28 = vld [vmem:[%s1860_s5 + $0x100] sm:$0xff]  ;;  %v183_v32 = vld [vmem:[%s1860_s5 + $0x50] sm:$0xff]  ;;  %v184_v33 = vld [vmem:[%s1860_s5 + $0x58] sm:$0xff] }
   0xb   :  { %1159 = vmatmul.mubr.msk.f32.vlgmr.msra.gmra.mrb[0].mxu0 %vm71_vm0, %v44_v11  ;;  %v195_v34 = vld [vmem:[%s1860_s5 + $0xb0] sm:$0xff]  ;;  %v196_v35 = vld [vmem:[%s1860_s5 + $0xb8] sm:$0xff]  ;;  %v178_v54 = vld [vmem:[%s1860_s5 + $0x28] sm:$0xff] }
   0xc   :  { %1161 = vmatprep.mubr.msk.f32.mxu0 %vm71_vm0, %v45_v12  ;;  %v207_v36 = vld [vmem:[%s1860_s5 + $0x110] sm:$0xff]  ;;  %v208_v37 = vld [vmem:[%s1860_s5 + $0x118] sm:$0xff]  ;;  %v177_v55 = vld [vmem:[%s1860_s5 + $0x20] sm:$0xff] }
   0xd   :  { %243 = vperm.xlu0 %1217, %v173_v13   ;;  %v190_v56 = vld [vmem:[%s1860_s5 + $0x88] sm:$0xff]  ;;  %v189_v57 = vld [vmem:[%s1860_s5 + $0x80] sm:$0xff]  ;;  %v180_v60 = vld [vmem:[%s1860_s5 + $0x38] sm:$0xff] }
   0xe   :  { %272 = vperm.xlu1 %1218, %v186_v17   ;;  %v202_v58 = vld [vmem:[%s1860_s5 + $0xe8] sm:$0xff]  ;;  %v201_v59 = vld [vmem:[%s1860_s5 + $0xe0] sm:$0xff]  ;;  %v179_v61 = vld [vmem:[%s1860_s5 + $0x30] sm:$0xff] }
   0xf   :  { %1162 = vmatmul.mubr.msk.f32.gmra.mrb[2].mxu0 %vm71_vm0, %v46_v15  ;;  %v192_v62 = vld [vmem:[%s1860_s5 + $0x98] sm:$0xff]  ;;  %v191_v63 = vld [vmem:[%s1860_s5 + $0x90] sm:$0xff] }
  0x10   :  { %v204_v0 = vld [vmem:[%s1860_s5 + $0xf8] sm:$0xff]  ;;  %v203_v1 = vld [vmem:[%s1860_s5 + $0xf0] sm:$0xff] }
  0x11   :  { %267 = vperm.xlu0 %1217, %v185_v16  }
  0x12   :  { %300 = vperm.xlu1 %1218, %v198_v19  }
  0x15   :  { %295 = vperm.xlu0 %1217, %v197_v18  }
  0x16   :  { %408 = vperm.xlu1 %1218, %v182_v21  }
  0x19   :  { %403 = vperm.xlu0 %1217, %v181_v20  }
  0x1a   :  { %432 = vperm.xlu1 %1218, %v194_v23  }
  0x1d   :  { %427 = vperm.xlu0 %1217, %v193_v22   ;;  %v217_v22 = vlaneseq }
  0x1e   :  { %258 = vperm.xlu1 %1218, %v176_v25  }
  0x1f   :  { %v1464_v23 = vshrl.u32 %v217_v22, 7 }
  0x21   :  { %253 = vperm.xlu0 %1217, %v175_v24  }
  0x22   :  { %282 = vperm.xlu1 %1218, %v188_v27   ;;  %v1474_v27 = vld [vmem:[%s1861_s0] sm:$0xf]  ;;  %s1222_s0 = smov 1  }
  0x25   :  { %277 = vperm.xlu0 %1217, %v187_v26   ;;  %v219_v26 = vsub.s32 0, %v1464_v23 }
  0x26   :  { %460 = vperm.xlu1 %1218, %v206_v29  }
  0x29   :  { %455 = vperm.xlu0 %1217, %v205_v28  }
  0x2a   :  { %310 = vperm.xlu1 %1218, %v200_v31   ;;  %v235_v31 = vsub.s32 1, %v1464_v23 }
  0x2d   :  { %305 = vperm.xlu0 %1217, %v199_v30   ;;  %v1477_v30 = vrot.slane %v1474_v27, %v219_v26 }
  0x2e   :  { %418 = vperm.xlu1 %1218, %v184_v33  }
  0x31   :  { %413 = vperm.xlu0 %1217, %v183_v32  }
  0x32   :  { %442 = vperm.xlu1 %1218, %v196_v35   ;;  %v1484_v35 = vrot.slane %v1474_v27, %v235_v31 }
  0x35   :  { %437 = vperm.xlu0 %1217, %v195_v34  }
  0x36   :  { %470 = vperm.xlu1 %1218, %v208_v37  }
  0x39   :  { %465 = vperm.xlu0 %1217, %v207_v36  }
  0x81   :  { %v64_v39 = vpop.permute.xlu1 %63 }
  0x84   :  { %v54_v38 = vpop.permute.xlu0 %53 }
  0x85   :  { %v69_v49 = vpop.permute.xlu1 %68 }
  0x88   :  { %v59_v40 = vpop.permute.xlu0 %58 }
  0x89   :  { %v249_v2 = vpop.permute.xlu1 %248 }
  0x8c   :  { %v244_v3 = vpop.permute.xlu0 %243 }
  0x8d   :  { %v273_v4 = vpop.permute.xlu1 %272 }
  0x90   :  { %v268_v5 = vpop.permute.xlu0 %267 }
  0x91   :  { %v301_v6 = vpop.permute.xlu1 %300 }
  0x94   :  { %v296_v7 = vpop.permute.xlu0 %295 }
  0x95   :  { %v409_v8 = vpop.permute.xlu1 %408 }
  0x98   :  { %v404_v9 = vpop.permute.xlu0 %403 }
  0x99   :  { %v433_v10 = vpop.permute.xlu1 %432 }
  0x9c   :  { %v428_v11 = vpop.permute.xlu0 %427 }
  0x9d   :  { %v259_v12 = vpop.permute.xlu1 %258 }
  0xa0   :  { %v254_v13 = vpop.permute.xlu0 %253 }
  0xa1   :  { %v283_v14 = vpop.permute.xlu1 %282 }
  0xa4   :  { %v278_v15 = vpop.permute.xlu0 %277 }
  0xa5   :  { %v461_v16 = vpop.permute.xlu1 %460 }
  0xa8   :  { %v456_v17 = vpop.permute.xlu0 %455 }
  0xa9   :  { %v311_v18 = vpop.permute.xlu1 %310 }
  0xac   :  { %v1462_v19 = vpop.permute.xlu0 %305 }
  0xad   :  { %v419_v20 = vpop.permute.xlu1 %418 }
  0xb0   :  { %v414_v21 = vpop.permute.xlu0 %413 }
  0xb1   :  { %v1466_v24 = vpop.permute.xlu1 %442 }
  0xb4   :  { %v1468_v25 = vpop.permute.xlu0 %437 }
  0xb5   :  { %v471_v28 = vpop.permute.xlu1 %470 }
  0xb8   :  { %v466_v29 = vpop.permute.xlu0 %465 }
  0xde   :  { %v1160_v41 = vpop.f32.mrb[0].mxu0 }
  0xdf   :  { %v1390_v42 = vadd.f32 %v1160_v41, %v59_v40  ;;  %v150_v43 = vpop.f32.mrb[1].mxu0 }
  0xe0   :  { %v1392_v44 = vadd.f32 %v150_v43, %v54_v38 }
  0xe1   :  { %v1395_v45 = vmax.f32 %v1390_v42, 0.0 }
  0xe2   :  { %v1398_v46 = vmax.f32 %v1392_v44, 0.0  ;;  %v1163_v47 = vpop.f32.mrb[2].mxu0 }
  0xe3   :  { %211 = vrot.lane.b32.xlu1 %v1395_v45, %s1220_s4  ;;  %v160_v48 = vpop.f32.mrb[3].mxu0  ;;  %v1404_v50 = vadd.f32 %v1163_v47, %v69_v49  ;;  %v286_v43 = vmul.f32 %v273_v4, %v1395_v45 }
  0xe4   :  { %209 = vrot.lane.b32.xlu0 %v1398_v46, %s1220_s4  ;;  %v1406_v51 = vadd.f32 %v160_v48, %v64_v39  ;;  %v285_v48 = vmul.f32 %v268_v5, %v1398_v46  ;;  %v445_v4 = vmul.f32 %v428_v11, %v1398_v46 }
  0xe5   :  { %v1413_v52 = vmax.f32 %v1404_v50, 0.0 }
  0xe6   :  { %v1416_v53 = vmax.f32 %v1406_v51, 0.0 }
  0xe7   :  { %227 = vrot.lane.b32.xlu1 %v1395_v45, %s1221_s18  ;;  %v288_v22 = vmul.f32 %v283_v14, %v1413_v52 }
  0xe8   :  { %225 = vrot.lane.b32.xlu0 %v1398_v46, %s1221_s18  ;;  %v287_v26 = vmul.f32 %v278_v15, %v1416_v53  ;;  %v448_v15 = vmul.f32 %v1466_v24, %v1413_v52 }
  0xeb   :  { %215 = vrot.lane.b32.xlu1 %v1413_v52, %s1220_s4 }
  0xec   :  { %213 = vrot.lane.b32.xlu0 %v1416_v53, %s1220_s4 }
  0xef   :  { %231 = vrot.lane.b32.xlu1 %v1413_v52, %s1221_s18 }
  0xf0   :  { %229 = vrot.lane.b32.xlu0 %v1416_v53, %s1221_s18 }
  0xf3   :  { %328 = vperm.xlu1 %1218, %v178_v54  }
  0xf4   :  { %323 = vperm.xlu0 %1217, %v177_v55  }
  0xf7   :  { %352 = vperm.xlu1 %1218, %v190_v56  }
  0xf8   :  { %347 = vperm.xlu0 %1217, %v189_v57  }
  0xfb   :  { %380 = vperm.xlu1 %1218, %v202_v58  }
  0xfc   :  { %375 = vperm.xlu0 %1217, %v201_v59  }
  0xff   :  { %338 = vperm.xlu1 %1218, %v180_v60  }
 0x100   :  { %333 = vperm.xlu0 %1217, %v179_v61  }
 0x103   :  { %362 = vperm.xlu1 %1218, %v192_v62  }
 0x104   :  { %357 = vperm.xlu0 %1217, %v191_v63  }
 0x107   :  { %390 = vperm.xlu1 %1218, %v204_v0   ;;  %v446_v0 = vmul.f32 %v433_v10, %v1395_v45 }
 0x108   :  { %385 = vperm.xlu0 %1217, %v203_v1  }
 0x155   :  { %v212_v32 = vpop.permute.xlu1 %211 }
 0x156   :  { %v1481_v33 = vmul.f32 %v1477_v30, %v212_v32  ;;  %v210_v34 = vpop.permute.xlu0 %209 }
 0x157   :  { %v1487_v36 = vmul.f32 %v1477_v30, %v210_v34 }
 0x158   :  { %v262_v37 = vmul.f32 %v249_v2, %v1481_v33  ;;  %v422_v49 = vmul.f32 %v409_v8, %v1481_v33 }
 0x159   :  { %v261_v38 = vmul.f32 %v244_v3, %v1487_v36  ;;  %v228_v39 = vpop.permute.xlu1 %227  ;;  %v421_v56 = vmul.f32 %v404_v9, %v1487_v36 }
 0x15a   :  { %v1492_v40 = vmul.f32 %v1484_v35, %v228_v39  ;;  %v226_v41 = vpop.permute.xlu0 %225  ;;  %v290_v55 = vadd.f32 %v286_v43, %v262_v37 }
 0x15b   :  { %v1496_v47 = vmul.f32 %v1484_v35, %v226_v41  ;;  %v289_v59 = vadd.f32 %v285_v48, %v261_v38  ;;  %v449_v9 = vadd.f32 %v445_v4, %v421_v56  ;;  %v447_v41 = vmul.f32 %v1468_v25, %v1416_v53  ;;  %v526_v25 = vld [vmem:[%s1863_s7 + $0x8] sm:$0xff]  ;;  %v528_v48 = vld [vmem:[%s1863_s7 + $0x18] sm:$0xff]  ;;  %v663_v4 = vld [vmem:[%s1864_s8 + $0x60] sm:$0xff] }
 0x15c   :  { %v314_v54 = vmul.f32 %v301_v6, %v1492_v40  ;;  %v474_v60 = vmul.f32 %v461_v16, %v1492_v40  ;;  %v450_v6 = vadd.f32 %v446_v0, %v422_v49  ;;  %v652_v56 = vld [vmem:[%s1864_s8 + $0x8] sm:$0xff] }
 0x15d   :  { %v313_v57 = vmul.f32 %v296_v7, %v1496_v47  ;;  %v216_v58 = vpop.permute.xlu1 %215  ;;  %v473_v1 = vmul.f32 %v456_v17, %v1496_v47  ;;  %v664_v0 = vld [vmem:[%s1864_s8 + $0x68] sm:$0xff] }
 0x15e   :  { %v1505_v61 = vmul.f32 %v1477_v30, %v216_v58  ;;  %v214_v62 = vpop.permute.xlu0 %213  ;;  %v318_v63 = vadd.f32 %v314_v54, %v290_v55  ;;  %v478_v17 = vadd.f32 %v474_v60, %v450_v6  ;;  %v527_v54 = vld [vmem:[%s1863_s7 + $0x10] sm:$0xff]  ;;  %v651_v58 = vld [vmem:[%s1864_s8] sm:$0xff] }
 0x15f   :  { %v1510_v2 = vmul.f32 %v1477_v30, %v214_v62  ;;  %v317_v3 = vadd.f32 %v313_v57, %v289_v59 }
 0x160   :  { %v264_v5 = vmul.f32 %v259_v12, %v1505_v61  ;;  %483 = vrot.lane.b32.xlu1 %v318_v63, %s1222_s0  ;;  %v477_v12 = vadd.f32 %v473_v1, %v449_v9  ;;  %v424_v31 = vmul.f32 %v419_v20, %v1505_v61 }
 0x161   :  { %v263_v7 = vmul.f32 %v254_v13, %v1510_v2  ;;  %v232_v8 = vpop.permute.xlu1 %231  ;;  %481 = vrot.lane.b32.xlu0 %v317_v3, %s1222_s0  ;;  %v423_v34 = vmul.f32 %v414_v21, %v1510_v2 }
 0x162   :  { %v1518_v10 = vmul.f32 %v1484_v35, %v232_v8  ;;  %v230_v16 = vpop.permute.xlu0 %229  ;;  %v292_v32 = vadd.f32 %v288_v22, %v264_v5  ;;  %v452_v21 = vadd.f32 %v448_v15, %v424_v31  ;;  %v659_v22 = vld [vmem:[%s1864_s8 + $0x40] sm:$0xff] }
 0x163   :  { %v1522_v11 = vmul.f32 %v1484_v35, %v230_v16  ;;  %v291_v14 = vadd.f32 %v287_v26, %v263_v7  ;;  %v675_v16 = vld [vmem:[%s1864_s8 + $0xc0] sm:$0xff] }
 0x164   :  { %v316_v13 = vmul.f32 %v311_v18, %v1518_v10  ;;  %503 = vrot.lane.b32.xlu1 %v478_v17, %s1223_s23  ;;  %v476_v38 = vmul.f32 %v471_v28, %v1518_v10  ;;  %v451_v28 = vadd.f32 %v447_v41, %v423_v34  ;;  %v684_v41 = vld [vmem:[%s1864_s8 + $0x108] sm:$0xff] }
 0x165   :  { %v315_v37 = vmul.f32 %v1462_v19, %v1522_v11  ;;  %501 = vrot.lane.b32.xlu0 %v477_v12, %s1223_s23  ;;  %v475_v18 = vmul.f32 %v466_v29, %v1522_v11  ;;  %v521_v19 = vld [vmem:[%s1862_s6] sm:$0xff] }
 0x166   :  { %v320_v39 = vadd.f32 %v316_v13, %v292_v32  ;;  %1172 = vmatprep.mubr.msk.f32.mxu1 %vm549_vm1, %v521_v19  ;;  %v480_v24 = vadd.f32 %v476_v38, %v452_v21  ;;  %v525_v29 = vld [vmem:[%s1863_s7] sm:$0xff]  ;;  %v672_v32 = vld [vmem:[%s1864_s8 + $0xa8] sm:$0xff]  ;;  %v678_v19 = vld [vmem:[%s1864_s8 + $0xd8] sm:$0xff] }
 0x167   :  { %v319_v20 = vadd.f32 %v315_v37, %v291_v14  ;;  %v479_v43 = vadd.f32 %v475_v18, %v451_v28  ;;  %v671_v14 = vld [vmem:[%s1864_s8 + $0xa0] sm:$0xff]  ;;  %v654_v18 = vld [vmem:[%s1864_s8 + $0x18] sm:$0xff]  ;;  %v677_v28 = vld [vmem:[%s1864_s8 + $0xd0] sm:$0xff] }
 0x168   :  { %487 = vrot.lane.b32.xlu1 %v320_v39, %s1222_s0  ;;  %v683_v21 = vld [vmem:[%s1864_s8 + $0x100] sm:$0xff] }
 0x169   :  { %485 = vrot.lane.b32.xlu0 %v319_v20, %s1222_s0  ;;  %v653_v20 = vld [vmem:[%s1864_s8 + $0x10] sm:$0xff] }
 0x16c   :  { %507 = vrot.lane.b32.xlu1 %v480_v24, %s1223_s23  ;;  %v662_v24 = vld [vmem:[%s1864_s8 + $0x58] sm:$0xff] }
 0x16d   :  { %505 = vrot.lane.b32.xlu0 %v479_v43, %s1223_s23  ;;  %v661_v43 = vld [vmem:[%s1864_s8 + $0x50] sm:$0xff] }
 0x170   :  { %536 = vperm.xlu1 %1218, %v526_v25   ;;  %v674_v25 = vld [vmem:[%s1864_s8 + $0xb8] sm:$0xff] }
 0x171   :  { %531 = vperm.xlu0 %1217, %v525_v29   ;;  %v673_v29 = vld [vmem:[%s1864_s8 + $0xb0] sm:$0xff] }
 0x172   :  { %v329_v49 = vpop.permute.xlu1 %328 }
 0x173   :  { %v324_v55 = vpop.permute.xlu0 %323  ;;  %v342_v63 = vmul.f32 %v329_v49, %v1481_v33  ;;  %v685_v49 = vld [vmem:[%s1864_s8 + $0x110] sm:$0xff] }
 0x174   :  { %546 = vperm.xlu1 %1218, %v528_v48   ;;  %v341_v1 = vmul.f32 %v324_v55, %v1487_v36  ;;  %v676_v36 = vld [vmem:[%s1864_s8 + $0xc8] sm:$0xff]  ;;  %v686_v48 = vld [vmem:[%s1864_s8 + $0x118] sm:$0xff] }
 0x175   :  { %541 = vperm.xlu0 %1217, %v527_v54   ;;  %v491_v54 = vsub.s32 2, %v1464_v23 }
 0x176   :  { %v353_v57 = vpop.permute.xlu1 %352 }
 0x177   :  { %v366_v59 = vmul.f32 %v353_v57, %v1395_v45  ;;  %v348_v60 = vpop.permute.xlu0 %347  ;;  %v1648_v55 = vrot.slane %v1474_v27, %v491_v54  ;;  %v669_v54 = vld [vmem:[%s1864_s8 + $0x90] sm:$0xff] }
 0x178   :  { %v365_v62 = vmul.f32 %v348_v60, %v1398_v46  ;;  %718 = vperm.xlu1 %1218, %v652_v56   ;;  %v511_v56 = vsub.s32 3, %v1464_v23 }
 0x179   :  { %713 = vperm.xlu0 %1217, %v651_v58   ;;  %v370_v5 = vadd.f32 %v366_v59, %v342_v63 }
 0x17a   :  { %v381_v3 = vpop.permute.xlu1 %380  ;;  %v369_v46 = vadd.f32 %v365_v62, %v341_v1  ;;  %v1653_v60 = vrot.slane %v1474_v27, %v511_v56  ;;  %v682_v56 = vld [vmem:[%s1864_s8 + $0xf8] sm:$0xff] }
 0x17b   :  { %v394_v45 = vmul.f32 %v381_v3, %v1492_v40  ;;  %v376_v6 = vpop.permute.xlu0 %375 }
 0x17c   :  { %v393_v7 = vmul.f32 %v376_v6, %v1496_v47  ;;  %742 = vperm.xlu1 %1218, %v664_v0   ;;  %v660_v47 = vld [vmem:[%s1864_s8 + $0x48] sm:$0xff] }
 0x17d   :  { %v1576_v33 = vadd.f32 %v394_v45, %v370_v5  ;;  %737 = vperm.xlu0 %1217, %v663_v4  }
 0x17e   :  { %v1581_v8 = vadd.f32 %v393_v7, %v369_v46  ;;  %v339_v9 = vpop.permute.xlu1 %338 }
 0x17f   :  { %v334_v40 = vpop.permute.xlu0 %333  ;;  %v344_v13 = vmul.f32 %v339_v9, %v1505_v61 }
 0x180   :  { %770 = vperm.xlu1 %1218, %v676_v36   ;;  %v343_v34 = vmul.f32 %v334_v40, %v1510_v2 }
 0x181   :  { %765 = vperm.xlu0 %1217, %v675_v16  }
 0x182   :  { %v363_v17 = vpop.permute.xlu1 %362 }
 0x183   :  { %v368_v12 = vmul.f32 %v363_v17, %v1413_v52  ;;  %v358_v26 = vpop.permute.xlu0 %357 }
 0x184   :  { %v367_v31 = vmul.f32 %v358_v26, %v1416_v53  ;;  %878 = vperm.xlu1 %1218, %v660_v47   ;;  %v522_v26 = vld [vmem:[%s1862_s6 + $0x8] sm:$0xff] }
 0x185   :  { %873 = vperm.xlu0 %1217, %v659_v22   ;;  %v372_v38 = vadd.f32 %v368_v12, %v344_v13  ;;  %v524_v13 = vld [vmem:[%s1862_s6 + $0x18] sm:$0xff] }
 0x186   :  { %v391_v37 = vpop.permute.xlu1 %390  ;;  %v371_v53 = vadd.f32 %v367_v31, %v343_v34  ;;  %v523_v31 = vld [vmem:[%s1862_s6 + $0x10] sm:$0xff] }
 0x187   :  { %v396_v52 = vmul.f32 %v391_v37, %v1518_v10  ;;  %v386_v39 = vpop.permute.xlu0 %385  ;;  %v666_v10 = vld [vmem:[%s1864_s8 + $0x78] sm:$0xff] }
 0x188   :  { %v395_v15 = vmul.f32 %v386_v39, %v1522_v11  ;;  %902 = vperm.xlu1 %1218, %v672_v32   ;;  %v665_v11 = vld [vmem:[%s1864_s8 + $0x70] sm:$0xff] }
 0x189   :  { %v400_v61 = vadd.f32 %v396_v52, %v372_v38  ;;  %897 = vperm.xlu0 %1217, %v671_v14  }
 0x18a   :  { %v399_v2 = vadd.f32 %v395_v15, %v371_v53 }
 0x18c   :  { %728 = vperm.xlu1 %1218, %v654_v18  }
 0x18d   :  { %723 = vperm.xlu0 %1217, %v653_v20  }
 0x190   :  { %752 = vperm.xlu1 %1218, %v666_v10  }
 0x191   :  { %747 = vperm.xlu0 %1217, %v665_v11  }
 0x194   :  { %930 = vperm.xlu1 %1218, %v684_v41  }
 0x195   :  { %925 = vperm.xlu0 %1217, %v683_v21   ;;  %v656_v21 = vld [vmem:[%s1864_s8 + $0x28] sm:$0xff] }
 0x198   :  { %780 = vperm.xlu1 %1218, %v678_v19   ;;  %v655_v19 = vld [vmem:[%s1864_s8 + $0x20] sm:$0xff] }
 0x199   :  { %775 = vperm.xlu0 %1217, %v677_v28   ;;  %v668_v28 = vld [vmem:[%s1864_s8 + $0x88] sm:$0xff] }
 0x19c   :  { %888 = vperm.xlu1 %1218, %v662_v24   ;;  %v667_v24 = vld [vmem:[%s1864_s8 + $0x80] sm:$0xff] }
 0x19d   :  { %883 = vperm.xlu0 %1217, %v661_v43   ;;  %v680_v43 = vld [vmem:[%s1864_s8 + $0xe8] sm:$0xff] }
 0x1a0   :  { %912 = vperm.xlu1 %1218, %v674_v25   ;;  %v679_v25 = vld [vmem:[%s1864_s8 + $0xe0] sm:$0xff] }
 0x1a1   :  { %907 = vperm.xlu0 %1217, %v673_v29   ;;  %v658_v29 = vld [vmem:[%s1864_s8 + $0x38] sm:$0xff] }
 0x1a4   :  { %940 = vperm.xlu1 %1218, %v686_v48   ;;  %v657_v48 = vld [vmem:[%s1864_s8 + $0x30] sm:$0xff] }
 0x1a5   :  { %935 = vperm.xlu0 %1217, %v685_v49   ;;  %v670_v49 = vld [vmem:[%s1864_s8 + $0x98] sm:$0xff] }
 0x1d2   :  { %v484_v57 = vpop.permute.xlu1 %483 }
 0x1d3   :  { %v494_v58 = vmul.f32 %v1648_v55, %v484_v57  ;;  %v482_v59 = vpop.permute.xlu0 %481  ;;  %v681_v57 = vld [vmem:[%s1864_s8 + $0xf0] sm:$0xff] }
 0x1d4   :  { %v493_v62 = vmul.f32 %v1648_v55, %v482_v59 }
 0x1d5   :  { %v498_v0 = vadd.f32 %v494_v58, %v1576_v33 }
 0x1d6   :  { %v504_v63 = vpop.permute.xlu1 %503  ;;  %v497_v4 = vadd.f32 %v493_v62, %v1581_v8 }
 0x1d7   :  { %v514_v1 = vmul.f32 %v1653_v60, %v504_v63  ;;  %v502_v3 = vpop.permute.xlu0 %501 }
 0x1d8   :  { %v513_v5 = vmul.f32 %v1653_v60, %v502_v3 }
 0x1d9   :  { %v518_v23 = vadd.f32 %v514_v1, %v498_v0 }
 0x1da   :  { %v517_v45 = vadd.f32 %v513_v5, %v497_v4  ;;  %v488_v6 = vpop.permute.xlu1 %487 }
 0x1db   :  { %v496_v46 = vmul.f32 %v1648_v55, %v488_v6  ;;  %v486_v7 = vpop.permute.xlu0 %485 }
 0x1dc   :  { %v495_v27 = vmul.f32 %v1648_v55, %v486_v7  ;;  %v1196_v36 = vpack.c.bf16 %v518_v23, %v517_v45 }
 0x1dd   :  { %v500_v16 = vadd.f32 %v496_v46, %v400_v61 }
 0x1de   :  { %v508_v9 = vpop.permute.xlu1 %507  ;;  %1197 = vmatprep.subr.bf16.mxu1 %v1196_v36  ;;  %v499_v47 = vadd.f32 %v495_v27, %v399_v2 }
 0x1df   :  { %v516_v33 = vmul.f32 %v1653_v60, %v508_v9  ;;  %1199 = vmatpush3.bf16.msra.mxu1 %v1196_v36  ;;  %v506_v40 = vpop.permute.xlu0 %505 }
 0x1e0   :  { %v515_v8 = vmul.f32 %v1653_v60, %v506_v40 }
 0x1e1   :  { %v520_v17 = vadd.f32 %v516_v33, %v500_v16 }
 0x1e2   :  { %v519_v22 = vadd.f32 %v515_v8, %v499_v47 }
 0x1e4   :  { %v1200_v12 = vpack.c.bf16 %v520_v17, %v519_v22 }
 0x1e6   :  { %1201 = vmatprep.subr.bf16.mxu1 %v1200_v12 }
 0x1e7   :  { %1203 = vmatpush3.bf16.msra.mxu1 %v1200_v12 }
 0x1ea   :  { %1173 = vmatmul.mubr.msk.f32.vlgmr.msra.gmra.mrb[0].mxu1 %vm549_vm1, %v522_v26 }
 0x1eb   :  { %1175 = vmatprep.mubr.msk.f32.mxu1 %vm549_vm1, %v523_v31 }
 0x1ee   :  { %1176 = vmatmul.mubr.msk.f32.gmra.mrb[2].mxu1 %vm549_vm1, %v524_v13 }
 0x1ef   :  { %v537_v32 = vpop.permute.xlu1 %536 }
 0x1f0   :  { %v532_v37 = vpop.permute.xlu0 %531 }
 0x1f3   :  { %v547_v18 = vpop.permute.xlu1 %546 }
 0x1f4   :  { %v542_v2 = vpop.permute.xlu0 %541 }
 0x1f7   :  { %v719_v58 = vpop.permute.xlu1 %718 }
 0x1f8   :  { %v714_v59 = vpop.permute.xlu0 %713 }
 0x1fb   :  { %v743_v62 = vpop.permute.xlu1 %742 }
 0x1fc   :  { %v738_v63 = vpop.permute.xlu0 %737 }
 0x1ff   :  { %v771_v0 = vpop.permute.xlu1 %770 }
 0x200   :  { %v766_v1 = vpop.permute.xlu0 %765 }
 0x203   :  { %v879_v3 = vpop.permute.xlu1 %878 }
 0x204   :  { %v874_v4 = vpop.permute.xlu0 %873 }
 0x207   :  { %v903_v5 = vpop.permute.xlu1 %902 }
 0x208   :  { %v898_v23 = vpop.permute.xlu0 %897 }
 0x20b   :  { %v729_v45 = vpop.permute.xlu1 %728 }
 0x20c   :  { %v724_v6 = vpop.permute.xlu0 %723 }
 0x20f   :  { %v753_v46 = vpop.permute.xlu1 %752 }
 0x210   :  { %v748_v7 = vpop.permute.xlu0 %747 }
 0x213   :  { %v931_v27 = vpop.permute.xlu1 %930 }
 0x214   :  { %v926_v36 = vpop.permute.xlu0 %925 }
 0x217   :  { %v781_v9 = vpop.permute.xlu1 %780 }
 0x218   :  { %v776_v16 = vpop.permute.xlu0 %775 }
 0x21b   :  { %v889_v33 = vpop.permute.xlu1 %888 }
 0x21c   :  { %v884_v40 = vpop.permute.xlu0 %883 }
 0x21f   :  { %v913_v47 = vpop.permute.xlu1 %912 }
 0x220   :  { %v908_v8 = vpop.permute.xlu0 %907 }
 0x223   :  { %v941_v17 = vpop.permute.xlu1 %940 }
 0x224   :  { %v936_v22 = vpop.permute.xlu0 %935 }
 0x2bd   :  { %v1174_v34 = vpop.f32.mrb[0].mxu1 }
 0x2be   :  { %v634_v14 = vadd.f32 %v1174_v34, %v537_v32  ;;  %v628_v38 = vpop.f32.mrb[1].mxu1 }
 0x2bf   :  { %v629_v52 = vadd.f32 %v628_v38, %v532_v37 }
 0x2c0   :  { %v1676_v39 = vmax.f32 %v634_v14, 0.0 }
 0x2c1   :  { %v1678_v53 = vmax.f32 %v629_v52, 0.0  ;;  %v1177_v15 = vpop.f32.mrb[2].mxu1 }
 0x2c2   :  { %689 = vrot.lane.b32.xlu1 %v1676_v39, %s1220_s4  ;;  %v638_v61 = vpop.f32.mrb[3].mxu1  ;;  %v644_v20 = vadd.f32 %v1177_v15, %v547_v18  ;;  %v756_v14 = vmul.f32 %v743_v62, %v1676_v39 }
 0x2c3   :  { %687 = vrot.lane.b32.xlu0 %v1678_v53, %s1220_s4  ;;  %v639_v10 = vadd.f32 %v638_v61, %v542_v2  ;;  %v755_v15 = vmul.f32 %v738_v63, %v1678_v53 }
 0x2c4   :  { %v1688_v11 = vmax.f32 %v644_v20, 0.0 }
 0x2c5   :  { %v1690_v41 = vmax.f32 %v639_v10, 0.0 }
 0x2c6   :  { %701 = vrot.lane.b32.xlu1 %v1676_v39, %s1221_s18 }
 0x2c7   :  { %699 = vrot.lane.b32.xlu0 %v1678_v53, %s1221_s18 }
 0x2ca   :  { %693 = vrot.lane.b32.xlu1 %v1688_v11, %s1220_s4 }
 0x2cb   :  { %691 = vrot.lane.b32.xlu0 %v1690_v41, %s1220_s4 }
 0x2ce   :  { %705 = vrot.lane.b32.xlu1 %v1688_v11, %s1221_s18 }
 0x2cf   :  { %703 = vrot.lane.b32.xlu0 %v1690_v41, %s1221_s18 }
 0x2d2   :  { %798 = vperm.xlu1 %1218, %v656_v21  }
 0x2d3   :  { %793 = vperm.xlu0 %1217, %v655_v19  }
 0x2d6   :  { %822 = vperm.xlu1 %1218, %v668_v28  }
 0x2d7   :  { %817 = vperm.xlu0 %1217, %v667_v24   ;;  %v916_v24 = vmul.f32 %v903_v5, %v1676_v39 }
 0x2da   :  { %850 = vperm.xlu1 %1218, %v680_v43  }
 0x2db   :  { %845 = vperm.xlu0 %1217, %v679_v25  }
 0x2de   :  { %808 = vperm.xlu1 %1218, %v658_v29  }
 0x2df   :  { %803 = vperm.xlu0 %1217, %v657_v48  }
 0x2e2   :  { %832 = vperm.xlu1 %1218, %v670_v49   ;;  %v915_v49 = vmul.f32 %v898_v23, %v1678_v53  ;;  %v757_v23 = vmul.f32 %v748_v7, %v1690_v41 }
 0x2e3   :  { %827 = vperm.xlu0 %1217, %v669_v54  }
 0x2e6   :  { %860 = vperm.xlu1 %1218, %v682_v56  }
 0x2e7   :  { %855 = vperm.xlu0 %1217, %v681_v57  }
 0x334   :  { %v690_v12 = vpop.permute.xlu1 %689 }
 0x335   :  { %v1737_v26 = vmul.f32 %v690_v12, %v1477_v30  ;;  %v688_v31 = vpop.permute.xlu0 %687 }
 0x336   :  { %v1740_v13 = vmul.f32 %v688_v31, %v1477_v30 }
 0x337   :  { %v732_v32 = vmul.f32 %v719_v58, %v1737_v26  ;;  %v892_v2 = vmul.f32 %v879_v3, %v1737_v26  ;;  %v758_v3 = vmul.f32 %v753_v46, %v1688_v11 }
 0x338   :  { %v731_v34 = vmul.f32 %v714_v59, %v1740_v13  ;;  %v702_v37 = vpop.permute.xlu1 %701  ;;  %v891_v21 = vmul.f32 %v874_v4, %v1740_v13 }
 0x339   :  { %v1746_v38 = vmul.f32 %v702_v37, %v1484_v35  ;;  %v700_v52 = vpop.permute.xlu0 %699  ;;  %v760_v18 = vadd.f32 %v756_v14, %v732_v32  ;;  %v920_v58 = vadd.f32 %v916_v24, %v892_v2  ;;  %v918_v32 = vmul.f32 %v913_v47, %v1688_v11 }
 0x33a   :  { %v1750_v61 = vmul.f32 %v700_v52, %v1484_v35  ;;  %v759_v10 = vadd.f32 %v755_v15, %v731_v34  ;;  %v919_v62 = vadd.f32 %v915_v49, %v891_v21  ;;  %v917_v34 = vmul.f32 %v908_v8, %v1690_v41  ;;  %v988_v8 = vld [vmem:[%s1866_s10 + $0x8] sm:$0xff]  ;;  %v989_v15 = vld [vmem:[%s1866_s10 + $0x10] sm:$0xff] }
 0x33b   :  { %v784_v20 = vmul.f32 %v771_v0, %v1746_v38  ;;  %v944_v25 = vmul.f32 %v931_v27, %v1746_v38 }
 0x33c   :  { %v783_v19 = vmul.f32 %v766_v1, %v1750_v61  ;;  %v694_v28 = vpop.permute.xlu1 %693  ;;  %v943_v56 = vmul.f32 %v926_v36, %v1750_v61 }
 0x33d   :  { %v788_v43 = vadd.f32 %v784_v20, %v760_v18  ;;  %v1759_v29 = vmul.f32 %v694_v28, %v1477_v30  ;;  %v692_v48 = vpop.permute.xlu0 %691  ;;  %v948_v1 = vadd.f32 %v944_v25, %v920_v58 }
 0x33e   :  { %v787_v54 = vadd.f32 %v783_v19, %v759_v10  ;;  %v1764_v57 = vmul.f32 %v692_v48, %v1477_v30  ;;  %v947_v30 = vadd.f32 %v943_v56, %v919_v62 }
 0x33f   :  { %v734_v59 = vmul.f32 %v729_v45, %v1759_v29  ;;  %953 = vrot.lane.b32.xlu1 %v788_v43, %s1222_s0  ;;  %v894_v36 = vmul.f32 %v889_v33, %v1759_v29 }
 0x340   :  { %v733_v63 = vmul.f32 %v724_v6, %v1764_v57  ;;  %v706_v0 = vpop.permute.xlu1 %705  ;;  %951 = vrot.lane.b32.xlu0 %v787_v54, %s1222_s0  ;;  %v893_v46 = vmul.f32 %v884_v40, %v1764_v57  ;;  %v983_v40 = vld [vmem:[%s1865_s9] sm:$0xff] }
 0x341   :  { %v1772_v4 = vmul.f32 %v706_v0, %v1484_v35  ;;  %v704_v5 = vpop.permute.xlu0 %703  ;;  %v762_v27 = vadd.f32 %v758_v3, %v734_v59  ;;  %1186 = vmatprep.mubr.msk.f32.mxu0 %vm549_vm1, %v983_v40 }
 0x342   :  { %v1776_v45 = vmul.f32 %v704_v5, %v1484_v35  ;;  %v761_v12 = vadd.f32 %v757_v23, %v733_v63 }
 0x343   :  { %v786_v6 = vmul.f32 %v781_v9, %v1772_v4  ;;  %969 = vrot.lane.b32.xlu1 %v948_v1, %s1223_s23  ;;  %v946_v35 = vmul.f32 %v941_v17, %v1772_v4  ;;  %v922_v9 = vadd.f32 %v918_v32, %v894_v36  ;;  %v987_v17 = vld [vmem:[%s1866_s10] sm:$0xff] }
 0x344   :  { %v785_v31 = vmul.f32 %v776_v16, %v1776_v45  ;;  %967 = vrot.lane.b32.xlu0 %v947_v30, %s1223_s23  ;;  %v945_v33 = vmul.f32 %v936_v22, %v1776_v45  ;;  %v921_v16 = vadd.f32 %v917_v34, %v893_v46  ;;  %v990_v22 = vld [vmem:[%s1866_s10 + $0x18] sm:$0xff] }
 0x345   :  { %v790_v7 = vadd.f32 %v786_v6, %v762_v27  ;;  %v950_v47 = vadd.f32 %v946_v35, %v922_v9 }
 0x346   :  { %v789_v37 = vadd.f32 %v785_v31, %v761_v12  ;;  %v949_v14 = vadd.f32 %v945_v33, %v921_v16 }
 0x347   :  { %957 = vrot.lane.b32.xlu1 %v790_v7, %s1222_s0 }
 0x348   :  { %955 = vrot.lane.b32.xlu0 %v789_v37, %s1222_s0 }
 0x34b   :  { %973 = vrot.lane.b32.xlu1 %v950_v47, %s1223_s23 }
 0x34c   :  { %971 = vrot.lane.b32.xlu0 %v949_v14, %s1223_s23 }
 0x34f   :  { %998 = vperm.xlu1 %1218, %v988_v8  }
 0x350   :  { %993 = vperm.xlu0 %1217, %v987_v17  }
 0x351   :  { %v799_v52 = vpop.permute.xlu1 %798 }
 0x352   :  { %v794_v18 = vpop.permute.xlu0 %793  ;;  %v812_v19 = vmul.f32 %v799_v52, %v1737_v26 }
 0x353   :  { %1008 = vperm.xlu1 %1218, %v990_v22   ;;  %v811_v28 = vmul.f32 %v794_v18, %v1740_v13 }
 0x354   :  { %1003 = vperm.xlu0 %1217, %v989_v15   ;;  %v985_v15 = vld [vmem:[%s1865_s9 + $0x10] sm:$0xff] }
 0x355   :  { %v823_v2 = vpop.permute.xlu1 %822 }
 0x356   :  { %v836_v20 = vmul.f32 %v823_v2, %v1676_v39  ;;  %v818_v10 = vpop.permute.xlu0 %817 }
 0x357   :  { %v835_v21 = vmul.f32 %v818_v10, %v1678_v53 }
 0x358   :  { %v840_v43 = vadd.f32 %v836_v20, %v812_v19 }
 0x359   :  { %v851_v24 = vpop.permute.xlu1 %850  ;;  %v839_v49 = vadd.f32 %v835_v21, %v811_v28 }
 0x35a   :  { %v864_v25 = vmul.f32 %v851_v24, %v1746_v38  ;;  %v846_v48 = vpop.permute.xlu0 %845 }
 0x35b   :  { %v863_v54 = vmul.f32 %v846_v48, %v1750_v61 }
 0x35c   :  { %v868_v56 = vadd.f32 %v864_v25, %v840_v43 }
 0x35d   :  { %v867_v58 = vadd.f32 %v863_v54, %v839_v49  ;;  %v809_v59 = vpop.permute.xlu1 %808 }
 0x35e   :  { %v804_v62 = vpop.permute.xlu0 %803  ;;  %v814_v13 = vmul.f32 %v809_v59, %v1759_v29 }
 0x35f   :  { %v813_v0 = vmul.f32 %v804_v62, %v1764_v57 }
 0x361   :  { %v833_v39 = vpop.permute.xlu1 %832 }
 0x362   :  { %v838_v63 = vmul.f32 %v833_v39, %v1688_v11  ;;  %v828_v53 = vpop.permute.xlu0 %827 }
 0x363   :  { %v837_v26 = vmul.f32 %v828_v53, %v1690_v41 }
 0x364   :  { %v842_v38 = vadd.f32 %v838_v63, %v814_v13 }
 0x365   :  { %v861_v1 = vpop.permute.xlu1 %860  ;;  %v841_v61 = vadd.f32 %v837_v26, %v813_v0 }
 0x366   :  { %v866_v3 = vmul.f32 %v861_v1, %v1772_v4  ;;  %v856_v5 = vpop.permute.xlu0 %855 }
 0x367   :  { %v865_v30 = vmul.f32 %v856_v5, %v1776_v45 }
 0x368   :  { %v870_v23 = vadd.f32 %v866_v3, %v842_v38 }
 0x369   :  { %v869_v27 = vadd.f32 %v865_v30, %v841_v61 }
 0x3b1   :  { %v954_v36 = vpop.permute.xlu1 %953 }
 0x3b2   :  { %v960_v11 = vmul.f32 %v954_v36, %v1648_v55  ;;  %v952_v6 = vpop.permute.xlu0 %951 }
 0x3b3   :  { %v959_v41 = vmul.f32 %v952_v6, %v1648_v55 }
 0x3b4   :  { %v964_v29 = vadd.f32 %v960_v11, %v868_v56 }
 0x3b5   :  { %v970_v12 = vpop.permute.xlu1 %969  ;;  %v963_v31 = vadd.f32 %v959_v41, %v867_v58 }
 0x3b6   :  { %v976_v57 = vmul.f32 %v970_v12, %v1653_v60  ;;  %v968_v46 = vpop.permute.xlu0 %967 }
 0x3b7   :  { %v975_v4 = vmul.f32 %v968_v46, %v1653_v60 }
 0x3b8   :  { %v980_v32 = vadd.f32 %v976_v57, %v964_v29 }
 0x3b9   :  { %v979_v7 = vadd.f32 %v975_v4, %v963_v31  ;;  %v958_v35 = vpop.permute.xlu1 %957 }
 0x3ba   :  { %v962_v45 = vmul.f32 %v958_v35, %v1648_v55  ;;  %v956_v34 = vpop.permute.xlu0 %955 }
 0x3bb   :  { %v961_v37 = vmul.f32 %v956_v34, %v1648_v55  ;;  %v1204_v33 = vpack.c.bf16 %v980_v32, %v979_v7  ;;  %v984_v55 = vld [vmem:[%s1865_s9 + $0x8] sm:$0xff] }
 0x3bc   :  { %v966_v40 = vadd.f32 %v962_v45, %v870_v23 }
 0x3bd   :  { %v974_v9 = vpop.permute.xlu1 %973  ;;  %1205 = vmatprep.subr.bf16.mxu0 %v1204_v33  ;;  %v965_v14 = vadd.f32 %v961_v37, %v869_v27 }
 0x3be   :  { %v978_v16 = vmul.f32 %v974_v9, %v1653_v60  ;;  %1207 = vmatpush3.bf16.msra.mxu0 %v1204_v33  ;;  %v972_v47 = vpop.permute.xlu0 %971 }
 0x3bf   :  { %v977_v8 = vmul.f32 %v972_v47, %v1653_v60  ;;  %v986_v60 = vld [vmem:[%s1865_s9 + $0x18] sm:$0xff] }
 0x3c0   :  { %v982_v17 = vadd.f32 %v978_v16, %v966_v40 }
 0x3c1   :  { %v981_v22 = vadd.f32 %v977_v8, %v965_v14 }
 0x3c3   :  { %v1208_v52 = vpack.c.bf16 %v982_v17, %v981_v22 }
 0x3c5   :  { %1209 = vmatprep.subr.bf16.mxu0 %v1208_v52 }
 0x3c6   :  { %1211 = vmatpush3.bf16.msra.mxu0 %v1208_v52 }
 0x3c9   :  { %1187 = vmatmul.mubr.msk.f32.vlgmr.msra.gmra.mrb[4].mxu0 %vm549_vm1, %v984_v55 }
 0x3ca   :  { %1189 = vmatprep.mubr.msk.f32.mxu0 %vm549_vm1, %v985_v15 }
 0x3cd   :  { %1190 = vmatmul.mubr.msk.f32.gmra.mrb[6].mxu0 %vm549_vm1, %v986_v60 }
 0x3ce   :  { %v999_v18 = vpop.permute.xlu1 %998 }
 0x3cf   :  { %v994_v2 = vpop.permute.xlu0 %993 }
 0x3d2   :  { %v1009_v24 = vpop.permute.xlu1 %1008 }
 0x3d3   :  { %v1004_v48 = vpop.permute.xlu0 %1003 }
 0x49c   :  { %v1188_v20 = vpop.f32.mrb[4].mxu0 }
 0x49d   :  { %v1095_v10 = vadd.f32 %v1188_v20, %v999_v18  ;;  %v1089_v21 = vpop.f32.mrb[5].mxu0 }
 0x49e   :  { %v1090_v19 = vadd.f32 %v1089_v21, %v994_v2 }
 0x49f   :  { %v1109_v28 = vadd.f32 %v1095_v10, %v1404_v50 }
 0x4a0   :  { %v1108_v43 = vadd.f32 %v1090_v19, %v1406_v51  ;;  %v1191_v25 = vpop.f32.mrb[6].mxu0 }
 0x4a1   :  { %1111 = vst [vmem:[%s1867_s11 + $0x8] sm:$0xff] %v1109_v28  ;;  %v1105_v49 = vadd.f32 %v1191_v25, %v1009_v24  ;;  %v1099_v54 = vpop.f32.mrb[7].mxu0 }
 0x4a2   :  { %1110 = vst [vmem:[%s1867_s11] sm:$0xff] %v1108_v43  ;;  %v1100_v56 = vadd.f32 %v1099_v54, %v1004_v48 }
 0x4a3   :  { %v1113_v58 = vadd.f32 %v1105_v49, %v1390_v42 }
 0x4a4   :  { %v1112_v50 = vadd.f32 %v1100_v56, %v1392_v44 }
 0x4a5   :  { %1115 = vst [vmem:[%s1867_s11 + $0x18] sm:$0xff] %v1113_v58 }
 0x4a6   :  { %1114 = vst [vmem:[%s1867_s11 + $0x10] sm:$0xff] %v1112_v50 }

</bundles_post_ra>
